<compile_context>
chip_gen: v6e
topology: v6e:2x2x1
jax: 0.10.0
libtpu: 0.0.40
codegen_flags: <defaults>
</compile_context>

<pallas_src>
import functools

import jax
import jax.numpy as jnp
from jax.experimental import pallas as pl
from jax.experimental.pallas import tpu as pltpu


def _round_up(v, m):
    return (v + m - 1) // m * m


def _mlp_softmax_kernel(x_ref, w1_ref, b1_ref, w2_ref, b2_ref, w3_ref, b3_ref,
                        out_ref):
    # x arrives f32; cast to bf16 in-kernel (VPU cast is free, saves HBM traffic).
    x = x_ref[...].astype(jnp.bfloat16)

    # fc1 + ReLU  (f32 accumulate on MXU; bias/activation in f32, store bf16)
    h1 = jnp.dot(x, w1_ref[...], preferred_element_type=jnp.float32)
    h1 = jnp.maximum(h1 + b1_ref[...], 0.0).astype(jnp.bfloat16)

    # fc2 + ReLU
    h2 = jnp.dot(h1, w2_ref[...], preferred_element_type=jnp.float32)
    h2 = jnp.maximum(h2 + b2_ref[...], 0.0).astype(jnp.bfloat16)

    # fc3 (output columns padded to 128; pad columns carry -1e30 bias)
    logits = jnp.dot(h2, w3_ref[...], preferred_element_type=jnp.float32)
    logits = logits + b3_ref[...]

    # numerically-stable softmax over last dim; pad columns -> exp(-huge) == 0.
    # Exact divide (not approx reciprocal) so rows sum to 1 to f32 precision.
    m = jnp.max(logits, axis=-1, keepdims=True)
    e = jnp.exp(logits - m)
    denom = jnp.sum(e, axis=-1, keepdims=True)
    out_ref[...] = (e / denom).astype(out_ref.dtype)


def prepare_params(params):
    """One-time prep: bf16 weights, fc3/b3 padded to a lane-dense 128-wide slab."""
    w1, b1, w2, b2, w3, b3 = params
    A = w3.shape[1]
    A_pad = _round_up(A, 128)
    if A_pad != A:
        w3 = jnp.pad(w3, ((0, 0), (0, A_pad - A)))
        # large-negative bias on pad columns -> softmax gives them exactly 0
        b3 = jnp.pad(b3, ((0, 0), (0, A_pad - A)), constant_values=-1e30)
    return (w1.astype(jnp.bfloat16), b1.astype(jnp.float32),
            w2.astype(jnp.bfloat16), b2.astype(jnp.float32),
            w3.astype(jnp.bfloat16), b3.astype(jnp.float32))


def _pick_block_b(B, block_b):
    """Batch tile: big, but keep grid >= 2 when the batch allows (v7x megacore)."""
    B8 = _round_up(B, 8)
    if B8 <= 8:
        return 8
    return max(8, min(block_b, _round_up(pl.cdiv(B8, 2), 8)))


@functools.partial(jax.jit,
                   static_argnames=("action_size", "block_b", "return_padded"))
def continue_q_network(x, prepared_params, action_size, *,
                       block_b=512, return_padded=False):
    """x: [B, state_size] f32 -> [B, action_size] softmax probabilities.

    prepared_params must come from prepare_params(); with return_padded=True
    the padded [B_pad, A_pad] array is returned (pad columns are exactly 0),
    skipping the extra output-slice pass.
    """
    w1, b1, w2, b2, w3, b3 = prepared_params
    B, S = x.shape
    H1, H2 = w1.shape[1], w2.shape[1]
    A_pad = w3.shape[1]

    # ---- batch tiling --------------------------------------------------------
    bb = _pick_block_b(B, block_b)
    B_pad = _round_up(B, bb)
    if B_pad != B:
        x = jnp.pad(x, ((0, B_pad - B), (0, 0)))
    grid = (B_pad // bb,)

    in_specs = [
        pl.BlockSpec((bb, S), lambda i: (i, 0)),       # x tile (f32, cast in-kernel)
        pl.BlockSpec((S, H1), lambda i: (0, 0)),       # w1 (bf16, resident)
        pl.BlockSpec((1, H1), lambda i: (0, 0)),       # b1 (f32)
        pl.BlockSpec((H1, H2), lambda i: (0, 0)),      # w2 (bf16, resident)
        pl.BlockSpec((1, H2), lambda i: (0, 0)),       # b2 (f32)
        pl.BlockSpec((H2, A_pad), lambda i: (0, 0)),   # w3 (bf16, padded, resident)
        pl.BlockSpec((1, A_pad), lambda i: (0, 0)),    # b3 (f32, padded)
    ]
    out_specs = pl.BlockSpec((bb, A_pad), lambda i: (i, 0))

    out = pl.pallas_call(
        _mlp_softmax_kernel,
        out_shape=jax.ShapeDtypeStruct((B_pad, A_pad), jnp.float32),
        grid_spec=pl.GridSpec(
            grid=grid,
            in_specs=in_specs,
            out_specs=out_specs,
        ),
        compiler_params=pltpu.CompilerParams(
            dimension_semantics=("parallel",)),
    )(x, w1, b1, w2, b2, w3, b3)

    if return_padded:
        return out
    return out[:B, :action_size]


def init_params(key, state_size, action_size):
    """Deterministic init mimicking torch.nn.Linear default (U[-1/sqrt(fan_in), +])."""
    def linear(key, fan_in, fan_out):
        kw, kb = jax.random.split(key)
        bound = 1.0 / jnp.sqrt(fan_in)
        w = jax.random.uniform(kw, (fan_in, fan_out), jnp.float32, -bound, bound)
        b = jax.random.uniform(kb, (1, fan_out), jnp.float32, -bound, bound)
        return w, b

    k1, k2, k3 = jax.random.split(key, 3)
    w1, b1 = linear(k1, state_size, 512)
    w2, b2 = linear(k2, 512, 256)
    w3, b3 = linear(k3, 256, action_size)
    return (w1, b1, w2, b2, w3, b3)


def _reference(x, params):
    w1, b1, w2, b2, w3, b3 = params
    h1 = jax.nn.relu(x @ w1 + b1)
    h2 = jax.nn.relu(h1 @ w2 + b2)
    return jax.nn.softmax(h2 @ w3 + b3, axis=-1)


if __name__ == "__main__":
    state_size = 32
    action_size = 8
    batch = 16

    key = jax.random.PRNGKey(0)
    kx, kp = jax.random.split(key)

    x = jax.random.normal(kx, (batch, state_size), jnp.float32)
    params = init_params(kp, state_size, action_size)
    prepared = prepare_params(params)

    # Default block_b=512; _pick_block_b keeps grid >= 2 here (bb=8, grid=2),
    # exercising the multi-step parallel grid even at toy batch size.
    out = continue_q_network(x, prepared, action_size)
    out = jax.block_until_ready(out)

    ref = _reference(x, params)
    assert out.shape == (batch, action_size)
    # bf16 matmul inputs -> loosen tolerance vs f32 reference.
    assert jnp.allclose(out, ref, atol=3e-2, rtol=3e-2), "mismatch vs reference"
    # exact f32 divide -> rows sum to 1 to ~1e-6
    assert jnp.allclose(jnp.sum(out, axis=-1), 1.0, atol=1e-3), "softmax rows must sum to 1"

    # padded fast-path: pad columns must be exactly 0 and valid columns match
    out_pad = jax.block_until_ready(
        continue_q_network(x, prepared, action_size, return_padded=True))
    assert jnp.allclose(out_pad[:batch, :action_size], out)
    assert jnp.all(out_pad[:batch, action_size:] == 0.0)

    print("KERNEL_OK")
</pallas_src>

<mosaic_0001>
module attributes {stable_mosaic.version = 11 : i64} {
  func.func @_mlp_softmax_kernel(%arg0: i32, %arg1: memref<8x32xf32, #tpu.memory_space<vmem>>, %arg2: memref<32x512xbf16, #tpu.memory_space<vmem>>, %arg3: memref<1x512xf32, #tpu.memory_space<vmem>>, %arg4: memref<512x256xbf16, #tpu.memory_space<vmem>>, %arg5: memref<1x256xf32, #tpu.memory_space<vmem>>, %arg6: memref<256x128xbf16, #tpu.memory_space<vmem>>, %arg7: memref<1x128xf32, #tpu.memory_space<vmem>>, %arg8: memref<8x128xf32, #tpu.memory_space<vmem>>) attributes {dimension_semantics = [#tpu.dimension_semantics<parallel>], iteration_bounds = array<i64: 2>, scalar_prefetch = 0 : i64, scratch_operands = 0 : i64, tpu.core_type = #tpu.core_type<tc>, window_params = [{transform_indices = @transform_0, window_bounds = array<i64: 8, 32>}, {pipeline_mode = #tpu.pipeline_mode<synchronous>, transform_indices = @transform_1, window_bounds = array<i64: 32, 512>}, {pipeline_mode = #tpu.pipeline_mode<synchronous>, transform_indices = @transform_2, window_bounds = array<i64: 1, 512>}, {pipeline_mode = #tpu.pipeline_mode<synchronous>, transform_indices = @transform_3, window_bounds = array<i64: 512, 256>}, {pipeline_mode = #tpu.pipeline_mode<synchronous>, transform_indices = @transform_4, window_bounds = array<i64: 1, 256>}, {pipeline_mode = #tpu.pipeline_mode<synchronous>, transform_indices = @transform_5, window_bounds = array<i64: 256, 128>}, {pipeline_mode = #tpu.pipeline_mode<synchronous>, transform_indices = @transform_6, window_bounds = array<i64: 1, 128>}, {transform_indices = @transform_7, window_bounds = array<i64: 8, 128>}]} {
    %c0 = arith.constant 0 : index
    %c0_0 = arith.constant 0 : index
    %0 = vector.load %arg1[%c0, %c0_0] : memref<8x32xf32, #tpu.memory_space<vmem>>, vector<8x32xf32>
    %1 = arith.truncf %0 : vector<8x32xf32> to vector<8x32xbf16>
    %c0_1 = arith.constant 0 : index
    %c0_2 = arith.constant 0 : index
    %2 = vector.load %arg2[%c0_1, %c0_2] : memref<32x512xbf16, #tpu.memory_space<vmem>>, vector<32x512xbf16>
    %cst = arith.constant dense<0.000000e+00> : vector<8x512xf32>
    %3 = tpu.matmul %1, %2, %cst {dimension_numbers = #tpu.dot_dimension_numbers<[1], [0], [0], [1], [0, 0, 1, 1], [], []>} : vector<8x32xbf16>, vector<32x512xbf16>, vector<8x512xf32> -> vector<8x512xf32>
    %c0_3 = arith.constant 0 : index
    %c0_4 = arith.constant 0 : index
    %4 = vector.load %arg3[%c0_3, %c0_4] : memref<1x512xf32, #tpu.memory_space<vmem>>, vector<1x512xf32>
    %5 = vector.broadcast %4 : vector<1x512xf32> to vector<8x512xf32>
    %6 = arith.addf %3, %5 : vector<8x512xf32>
    %cst_5 = arith.constant 0.000000e+00 : f32
    %7 = vector.broadcast %cst_5 : f32 to vector<8x512xf32>
    %8 = arith.maximumf %6, %7 : vector<8x512xf32>
    %9 = arith.truncf %8 : vector<8x512xf32> to vector<8x512xbf16>
    %c0_6 = arith.constant 0 : index
    %c0_7 = arith.constant 0 : index
    %10 = vector.load %arg4[%c0_6, %c0_7] : memref<512x256xbf16, #tpu.memory_space<vmem>>, vector<512x256xbf16>
    %cst_8 = arith.constant dense<0.000000e+00> : vector<8x256xf32>
    %11 = tpu.matmul %9, %10, %cst_8 {dimension_numbers = #tpu.dot_dimension_numbers<[1], [0], [0], [1], [0, 0, 1, 1], [], []>} : vector<8x512xbf16>, vector<512x256xbf16>, vector<8x256xf32> -> vector<8x256xf32>
    %c0_9 = arith.constant 0 : index
    %c0_10 = arith.constant 0 : index
    %12 = vector.load %arg5[%c0_9, %c0_10] : memref<1x256xf32, #tpu.memory_space<vmem>>, vector<1x256xf32>
    %13 = vector.broadcast %12 : vector<1x256xf32> to vector<8x256xf32>
    %14 = arith.addf %11, %13 : vector<8x256xf32>
    %cst_11 = arith.constant 0.000000e+00 : f32
    %15 = vector.broadcast %cst_11 : f32 to vector<8x256xf32>
    %16 = arith.maximumf %14, %15 : vector<8x256xf32>
    %17 = arith.truncf %16 : vector<8x256xf32> to vector<8x256xbf16>
    %c0_12 = arith.constant 0 : index
    %c0_13 = arith.constant 0 : index
    %18 = vector.load %arg6[%c0_12, %c0_13] : memref<256x128xbf16, #tpu.memory_space<vmem>>, vector<256x128xbf16>
    %cst_14 = arith.constant dense<0.000000e+00> : vector<8x128xf32>
    %19 = tpu.matmul %17, %18, %cst_14 {dimension_numbers = #tpu.dot_dimension_numbers<[1], [0], [0], [1], [0, 0, 1, 1], [], []>} : vector<8x256xbf16>, vector<256x128xbf16>, vector<8x128xf32> -> vector<8x128xf32>
    %c0_15 = arith.constant 0 : index
    %c0_16 = arith.constant 0 : index
    %20 = vector.load %arg7[%c0_15, %c0_16] : memref<1x128xf32, #tpu.memory_space<vmem>>, vector<1x128xf32>
    %21 = vector.broadcast %20 : vector<1x128xf32> to vector<8x128xf32>
    %22 = arith.addf %19, %21 : vector<8x128xf32>
    %cst_17 = arith.constant dense<0xFF800000> : vector<8xf32>
    %23 = vector.multi_reduction <maximumf>, %22, %cst_17 [1] : vector<8x128xf32> to vector<8xf32>
    %24 = vector.shape_cast %23 : vector<8xf32> to vector<8x1xf32>
    %25 = vector.broadcast %24 : vector<8x1xf32> to vector<8x128xf32>
    %26 = arith.subf %22, %25 : vector<8x128xf32>
    %27 = math.exp %26 : vector<8x128xf32>
    %cst_18 = arith.constant dense<0.000000e+00> : vector<8xf32>
    %28 = vector.multi_reduction <add>, %27, %cst_18 [1] : vector<8x128xf32> to vector<8xf32>
    %29 = vector.shape_cast %28 : vector<8xf32> to vector<8x1xf32>
    %30 = vector.broadcast %29 : vector<8x1xf32> to vector<8x128xf32>
    %31 = arith.divf %27, %30 : vector<8x128xf32>
    %c0_19 = arith.constant 0 : index
    %c0_20 = arith.constant 0 : index
    %32 = vector.load %arg8[%c0_19, %c0_20] : memref<8x128xf32, #tpu.memory_space<vmem>>, vector<8x128xf32>
    tpu.vector_store %arg8[%c0_19, %c0_20], %31 {strides = array<i32>} : memref<8x128xf32, #tpu.memory_space<vmem>>, vector<8x128xf32>,
    return
  }
  func.func @transform_0(%arg0: i32) -> (i32, i32) {
    %c0_i32 = arith.constant 0 : i32
    %c0_i32_0 = arith.constant 0 : i32
    return %arg0, %c0_i32 : i32, i32
  }
  func.func @transform_1(%arg0: i32) -> (i32, i32) {
    %c0_i32 = arith.constant 0 : i32
    %c0_i32_0 = arith.constant 0 : i32
    %c0_i32_1 = arith.constant 0 : i32
    return %c0_i32, %c0_i32_0 : i32, i32
  }
  func.func @transform_2(%arg0: i32) -> (i32, i32) {
    %c0_i32 = arith.constant 0 : i32
    %c0_i32_0 = arith.constant 0 : i32
    %c0_i32_1 = arith.constant 0 : i32
    return %c0_i32, %c0_i32_0 : i32, i32
  }
  func.func @transform_3(%arg0: i32) -> (i32, i32) {
    %c0_i32 = arith.constant 0 : i32
    %c0_i32_0 = arith.constant 0 : i32
    %c0_i32_1 = arith.constant 0 : i32
    return %c0_i32, %c0_i32_0 : i32, i32
  }
  func.func @transform_4(%arg0: i32) -> (i32, i32) {
    %c0_i32 = arith.constant 0 : i32
    %c0_i32_0 = arith.constant 0 : i32
    %c0_i32_1 = arith.constant 0 : i32
    return %c0_i32, %c0_i32_0 : i32, i32
  }
  func.func @transform_5(%arg0: i32) -> (i32, i32) {
    %c0_i32 = arith.constant 0 : i32
    %c0_i32_0 = arith.constant 0 : i32
    %c0_i32_1 = arith.constant 0 : i32
    return %c0_i32, %c0_i32_0 : i32, i32
  }
  func.func @transform_6(%arg0: i32) -> (i32, i32) {
    %c0_i32 = arith.constant 0 : i32
    %c0_i32_0 = arith.constant 0 : i32
    %c0_i32_1 = arith.constant 0 : i32
    return %c0_i32, %c0_i32_0 : i32, i32
  }
  func.func @transform_7(%arg0: i32) -> (i32, i32) {
    %c0_i32 = arith.constant 0 : i32
    %c0_i32_0 = arith.constant 0 : i32
    return %arg0, %c0_i32 : i32, i32
  }
}

</mosaic_0001>

<bundles_post_ra>
// kernel: continue_q_network.1
= control target key start
LH: loop header
LB: loop body
LE: loop exit
PB: predicated region body
PF: predicated region fallthrough
CT: control target
= control target key end

     0   :  { %12 = vsyncpa [#allocation3], 0  ;;  %s2044_s0 = inlined_call_operand.hbm [shape: f32[16,32], index: 0, kind: input, shape index: {}]   ;;  %s2045_s1 = inlined_call_operand.hbm [shape: bf16[32,512], index: 1, kind: input, shape index: {}]   ;;  %s2046_s2 = inlined_call_operand.hbm [shape: f32[1,512], index: 2, kind: input, shape index: {}]   ;;  %s2047_s3 = inlined_call_operand.hbm [shape: bf16[512,256], index: 3, kind: input, shape index: {}]   ;;  %s2048_s4 = inlined_call_operand.vmem [shape: f32[1,256], index: 4, kind: input, shape index: {}]   ;;  %s2049_s5 = inlined_call_operand.hbm [shape: bf16[256,128], index: 5, kind: input, shape index: {}]   ;;  %s2050_s6 = inlined_call_operand.vmem [shape: f32[1,128], index: 6, kind: input, shape index: {}]   ;;  %s2051_s7 = inlined_call_operand.vmem [shape: f32[16,128], index: 7, kind: output, shape index: {}]  }
   0x1   :  { %14 = vsyncpa [#allocation3 + $0x1], 0 }
   0x2   :  { %15 = vsyncpa [#allocation5], 0 }
   0x3   :  { %16 = vsyncpa [#allocation8], 0  ;;  %s1861_s24 = smov 0   ;;  %s1863_s25 = smov 0  }
   0x4   :  { %s1865_s26 = smov 0   ;;  %s1867_s27 = smov 0  }
   0x5 LB: > { %s1809_s28 = smov [#allocation4]   ;;  %s1882_s30 = sadd.s32 4294967295, %s1807_s27   ;;  %s1807_s27 = sphi %s1867_s27, %s2068_s27   ;;  %s1803_s26 = sphi %s1865_s26, %s2067_s26   ;;  %s1799_s25 = sphi %s1863_s25, %s2066_s25   ;;  %s1795_s24 = sphi %s1861_s24, %s2065_s24  }
   0x6   : > { %s217_s29 = sshll.u32 %s1809_s28, 4  ;;  %p1288_p0 = scmp.ge.s32.totalorder %s1807_s27, 1  ;;  %s218_s29 = int_to_ptr.vmem [resolvable:$true] %s217_s29 }
   0x7   : > { %p2052_p1 = scmp.eq.s32.totalorder %s1882_s30, 0  ;;  %p205_p2 = scmp.lt.s32.totalorder %s1807_s27, 3 }
   0x8   : > { %s1810_s9 = smov [#allocation7]   ;;  %s1811_s12 = smov [#allocation6]  }
   0x9   : > { %p1887_p3 = pnand %p1288_p0, %p205_p2  ;;  %s241_s10 = sshll.u32 %s1810_s9, 4  ;;  %s1899_s10 = int_to_ptr.vmem [resolvable:$true] %s241_s10 }
   0xa   : > { %s1901_s13 = sshll.u32 %s1811_s12, 4  ;;  %s1644_s14 = scalar_lea.vmem %s218_s29, 1024  ;;  %s232_s13 = int_to_ptr.vmem [resolvable:$true] %s1901_s13 }
   0xb   : > { %s2055_s8 = scalar_select %p1887_p3, 1, 0 }
   0xc   : > { %p1436_p4 = pneg %p1887_p3  ;;  %p1645_p7 = scmp.ne.s32.totalorder %s218_s29, %s1644_s14 }
   0xd   : > { %p1652_p10 = scmp.lt.s32.totalorder %s218_s29, %s218_s29  ;;  %p1653_p11 = scmp.lt.s32.totalorder %s1644_s14, %s1644_s14 }
   0xe   : > { %p1895_p5 = pnand %p1436_p4, %p2052_p1 }
   0xf   : > { %p1654_p12 = por %p1653_p11, %p1652_p10 }
  0x10   : > { %p1635_p6 = pneg %p1895_p5 }
  0x12   : > { %p1647_p8 = pnand %p1645_p7, %p1635_p6 }
  0x14   : > { %p1648_p9 = pneg %p1647_p8 }
  0x16   : > { %p1655_p13 = pnand %p1654_p12, %p1648_p9 }
  0x18   : > { %1658 = shalt.err (!%p1655_p13)
}
  0x19   : > { %s1812_s15 = smov 256   ;;  %s1813_s16 = smov 16  }
  0x1a   : > { %1439 = dma.hbm_to_vmem [thread:$0]  (!%p1895_p5), %s2045_s1, 1024, %s218_s29, [#allocation5], %s1812_s15, %s1812_s15, %s1813_s16  }
  0x1b   : > { %s1670_s19 = scalar_lea.vmem %s1899_s10, 8192  ;;  %p1678_p7 = scmp.lt.s32.totalorder %s1899_s10, %s1899_s10 }
  0x1c   : > { %p1671_p0 = scmp.ne.s32.totalorder %s1899_s10, %s1670_s19  ;;  %p1679_p8 = scmp.lt.s32.totalorder %s1670_s19, %s1670_s19 }
  0x1e   : > { %p1673_p2 = pnand %p1671_p0, %p1635_p6  ;;  %p1680_p9 = por %p1679_p8, %p1678_p7 }
  0x20   : > { %p1674_p4 = pneg %p1673_p2 }
  0x22   : > { %p1681_p10 = pnand %p1680_p9, %p1674_p4 }
  0x24   : > { %1684 = shalt.err (!%p1681_p10)
}
  0x25   : > { %s1814_s20 = smov 128   ;;  %s1815_s21 = smov 8  }
  0x26   : > { %1445 = dma.hbm_to_vmem [thread:$0]  (!%p1895_p5), %s2047_s3, 8192, %s1899_s10, [#allocation8], %s1814_s20, %s1814_s20, %s1815_s21  }
  0x27   : > { %s1696_s28 = scalar_lea.vmem %s232_s13, 64  ;;  %p1704_p0 = scmp.lt.s32.totalorder %s232_s13, %s232_s13 }
  0x28   : > { %p1697_p11 = scmp.ne.s32.totalorder %s232_s13, %s1696_s28  ;;  %p1705_p2 = scmp.lt.s32.totalorder %s1696_s28, %s1696_s28 }
  0x2a   : > { %p1699_p12 = pnand %p1697_p11, %p1635_p6  ;;  %p1706_p4 = por %p1705_p2, %p1704_p0 }
  0x2c   : > { %p1700_p13 = pneg %p1699_p12 }
  0x2e   : > { %p1707_p7 = pnand %p1706_p4, %p1700_p13 }
  0x30   : > { %1710 = shalt.err (!%p1707_p7)
}
  0x31   : > { %1442 = dma.hbm_to_vmem [thread:$0]  (!%p1895_p5), %s2046_s2, 64, %s232_s13, [#allocation5]  }
  0x32   : > { %s1816_s10 = smov [#allocation9]  }
  0x33   : > { %s257_s12 = sshll.u32 %s1816_s10, 4  ;;  %s258_s12 = int_to_ptr.vmem [resolvable:$true] %s257_s12 }
  0x34   : > { %s1722_s14 = scalar_lea.vmem %s258_s12, 2048  ;;  %p1730_p11 = scmp.lt.s32.totalorder %s258_s12, %s258_s12 }
  0x35   : > { %p1723_p8 = scmp.ne.s32.totalorder %s258_s12, %s1722_s14  ;;  %p1731_p12 = scmp.lt.s32.totalorder %s1722_s14, %s1722_s14 }
  0x37   : > { %p1725_p9 = pnand %p1723_p8, %p1635_p6  ;;  %p1732_p13 = por %p1731_p12, %p1730_p11 }
  0x39   : > { %p1726_p10 = pneg %p1725_p9 }
  0x3b   : > { %p1733_p0 = pnand %p1732_p13, %p1726_p10 }
  0x3d   : > { %1736 = shalt.err (!%p1733_p0)
}
  0x3e   : > { %s1817_s15 = smov 64   ;;  %s1818_s13 = smov 4  }
  0x3f   : > { %1448 = dma.hbm_to_vmem [thread:$0]  (!%p1895_p5), %s2049_s5, 2048, %s258_s12, [#allocation8], %s1817_s15, %s1817_s15, %s1818_s13  }
  0x40   : > { %s1944_s18 = sadd.s32 1, %s1807_s27   ;;  %s29_s19 = sadd.s32 1, %s1803_s26 }
  0x41   : > { %s26_s20 = ssub.s32 %s1807_s27, %s1944_s18  ;;  %p36_p6 = scmp.ne.s32.totalorder %s1803_s26, %s1799_s25 }
  0x42   : > { %p27_p2 = scmp.eq.s32.totalorder %s26_s20, 0  ;;  %p37_p4 = scmp.eq.s32.totalorder %s1807_s27, 0 }
  0x43   : > { %p42_p7 = scmp.ne.s32.totalorder %s1799_s25, %s1795_s24  ;;  %p1457_p8 = scmp.lt.s32.totalorder %s1807_s27, 2 }
  0x44   : > { %s1956_s21 = scalar_select %p27_p2, %s1803_s26, %s29_s19  }
  0x45   : > { %p38_p9 = por %p37_p4, %p36_p6  ;;  %p1960_p10 = por %p2052_p1, %p42_p7 }
  0x46   : > { %s274_s22 = sand.u32 1, %s1803_s26   ;;  %s1295_s23 = sshll.u32 %s1807_s27, 7 }
  0x47   : > { %s2057_s11 = scalar_select %p1960_p10, 1, 0 }
  0x48   : > { %s1294_s28 = sshll.u32 %s274_s22, 3  ;;  %s1969_s10 = scalar_lea.hbm %s2044_s0, %s1295_s23 }
  0x49   : > { %s278_s24 = scalar_lea.vmem [#allocation2], %s1294_s28  ;;  %p1971_p5 = pnand %p1457_p8, %p38_p9 }
  0x4a   : > { %s285_s12 = sshll.u32 %s278_s24, 4  ;;  %s275_s15 = scalar_lea.sflag [#allocation3], %s274_s22  ;;  %s286_s12 = int_to_ptr.vmem [resolvable:$true] %s285_s12 }
  0x4b   : > { %s1737_s13 = scalar_lea.hbm %s1969_s10, 128  ;;  %p1739_p12 = pneg %p1971_p5 }
  0x4c   : > { %p1738_p11 = scmp.ne.s32.totalorder %s1969_s10, %s1737_s13  ;;  %s1742_s17 = scalar_lea.hbm %s2044_s0, 256 }
  0x4d   : > { %p1743_p6 = scmp.lt.s32.totalorder %s1969_s10, %s2044_s0  ;;  %p1744_p2 = scmp.lt.s32.totalorder %s1742_s17, %s1737_s13 }
  0x4e   : > { %p1740_p13 = pnand %p1739_p12, %p1738_p11 }
  0x4f   : > { %p1745_p4 = por %p1744_p2, %p1743_p6 }
  0x50   : > { %p1741_p0 = pneg %p1740_p13 }
  0x52   : > { %p1746_p7 = pnand %p1745_p4, %p1741_p0 }
  0x54   : > { %1749 = shalt.err (!%p1746_p7)
}
  0x55   : > { %s1750_s23 = scalar_lea.vmem %s286_s12, 128  ;;  %s1819_s22 = smov [#allocation2]  }
  0x56   : > { %p1751_p8 = scmp.ne.s32.totalorder %s286_s12, %s1750_s23  ;;  %s1755_s28 = sshll.u32 %s1819_s22, 4  ;;  %s1756_s28 = int_to_ptr.vmem [resolvable:$false] %s1755_s28 }
  0x57   : > { %s1757_s29 = scalar_lea.vmem %s1756_s28, 256  ;;  %p1758_p11 = scmp.lt.s32.totalorder %s286_s12, %s1756_s28 }
  0x58   : > { %p1753_p9 = pnand %p1751_p8, %p1739_p12  ;;  %p1759_p13 = scmp.lt.s32.totalorder %s1757_s29, %s1750_s23 }
  0x5a   : > { %p1754_p1 = pneg %p1753_p9  ;;  %p1760_p10 = por %p1759_p13, %p1758_p11 }
  0x5c   : > { %p1761_p3 = pnand %p1760_p10, %p1754_p1 }
  0x5e   : > { %1764 = shalt.err (!%p1761_p3)
}
  0x5f   : > { %1452 = dma.hbm_to_vmem [thread:$0]  (!%p1971_p5), %s1969_s10, 128, %s286_s12, %s275_s15  }
  0x60   : > { %p2059_p0 = scmp.ne.s32.totalorder %s2055_s8, 0 }
  0x61   : > { %s296_s9 = sand.u32 (!%p2059_p0), 1, %s1799_s25   ;;  %p2060_p12 = scmp.ne.s32.totalorder (!%p2059_p0), %s2057_s11, 0 }
  0x62   : > { %294 = sbr.rel (%p2059_p0) target bundleno = 1041 (0x411), region = 48  ;;  %s1297_s24 = sshll.u32 (!%p2059_p0), %s296_s9, 3 }
  0x63   : > { %s297_s13 = scalar_lea.sflag (!%p2059_p0), [#allocation3], %s296_s9  ;;  %s300_s27 = scalar_lea.vmem (!%p2059_p0), [#allocation2], %s1297_s24 }
  0x67   : > { %1782 = dma.done.wait (%p2060_p12), %s297_s13, 128  }
  0x68   : > { %1784 = vsyncadd (%p2060_p12), %s297_s13, 4294967168  ;;  %p2061_p1 = scmp.eq.s32.totalorder %s1882_s30, 0 }
  0x6a   : > { %1786 = dma.done.wait (%p2061_p1), [#allocation5], 1088   ;;  %p2062_p3 = pmov %p2061_p1 }
  0x6b   : > { %p2063_p10 = pmov %p2061_p1 }
  0x6c   : > { %1788 = vsyncadd (%p2062_p3), [#allocation5], 4294966208 }
  0x6d   : > { %1790 = dma.done.wait (%p2063_p10), [#allocation8], 10240   ;;  %p2064_p5 = pmov %p2061_p1 }
  0x6e   : > { %v1820_v0 = vmov 0   ;;  %v1505_v1 = vld [vmem:[#allocation4 + $0x24] ss:$16 sps:$4 sm:$0xff]   ;;  %v1507_v2 = vld [vmem:[#allocation4 + $0x20] ss:$16 sps:$4 sm:$0xff]   ;;  %vm423_vm0 = vcmask 261120  }
  0x6f   : > { %1792 = vsyncadd (%p2064_p5), [#allocation8], 4294957056  ;;  %459 = vmatprep.mubr.bf16.mxu1 %v1820_v0  ;;  %439 = vmatprep.subr.bf16.mxu1 %v1505_v1  ;;  %v1508_v3 = vld [vmem:[#allocation4 + $0x4] ss:$16 sps:$4 sm:$0xff]   ;;  %v1510_v4 = vld [vmem:[#allocation4] ss:$16 sps:$4 sm:$0xff]  }
  0x70   : > { %440 = vmatpush1.bf16.msra.mxu1 %v1507_v2  ;;  %v351_v5 = vld [vmem:[%s300_s27] sm:$0xff]  ;;  %v1522_v13 = vld [vmem:[#allocation7 + $0x60] ss:$8 sps:$4 sm:$0xff]   ;;  %p346_p6 = scmp.lt.s32.totalorder %s1882_s30, 1 }
  0x71   : > { %441 = vmatprep.subr.bf16.mxu1 %v1508_v3  ;;  %v1513_v6 = vld [vmem:[#allocation4 + $0x2c] ss:$16 sps:$4 sm:$0xff]   ;;  %v1511_v7 = vld [vmem:[#allocation4 + $0x28] ss:$16 sps:$4 sm:$0xff]   ;;  %v352_v8 = vpack.c.bf16 %v351_v5, %v351_v5 }
  0x72   : > { %v1517_v9 = vld [vmem:[#allocation7 + $0x74] ss:$8 sps:$4 sm:$0xff]   ;;  %v1519_v10 = vld [vmem:[#allocation7 + $0x70] ss:$8 sps:$4 sm:$0xff]   ;;  %v1520_v11 = vld [vmem:[#allocation7 + $0x64] ss:$8 sps:$4 sm:$0xff]  }
  0x73   : > { %v1516_v12 = vld [vmem:[#allocation4 + $0xc] ss:$16 sps:$4 sm:$0xff]   ;;  %913 = vmatprep.subr.bf16.mxu0 %v1517_v9  ;;  %v1523_v14 = vld [vmem:[#allocation7 + $0x54] ss:$8 sps:$4 sm:$0xff]   ;;  %v1529_v18 = vld [vmem:[#allocation7 + $0x44] ss:$8 sps:$4 sm:$0xff]  }
  0x74   : > { %442 = vmatpush1.bf16.msra.mxu1 %v1510_v4  ;;  %914 = vmatpush1.bf16.msra.mxu0 %v1519_v10  ;;  %v1514_v15 = vld [vmem:[#allocation4 + $0x8] ss:$16 sps:$4 sm:$0xff]   ;;  %v1528_v17 = vld [vmem:[#allocation7 + $0x50] ss:$8 sps:$4 sm:$0xff]   ;;  %v1534_v21 = vld [vmem:[#allocation7 + $0x40] ss:$8 sps:$4 sm:$0xff]  }
  0x75   : > { %480 = vmatprep.subr.bf16.mxu1 %v1513_v6  ;;  %915 = vmatprep.subr.bf16.mxu0 %v1520_v11  ;;  %v1527_v16 = vld [vmem:[#allocation7 + $0x174] ss:$8 sps:$4 sm:$0xff]   ;;  %v1525_v19 = vld [vmem:[#allocation7 + $0x170] ss:$8 sps:$4 sm:$0xff]   ;;  %v1533_v20 = vld [vmem:[#allocation7 + $0x164] ss:$8 sps:$4 sm:$0xff]  }
  0x76   : > { %v1535_v22 = vld [vmem:[#allocation7 + $0x34] ss:$8 sps:$4 sm:$0xff]   ;;  %v1531_v23 = vld [vmem:[#allocation7 + $0x160] ss:$8 sps:$4 sm:$0xff]   ;;  %v1540_v25 = vld [vmem:[#allocation7 + $0x30] ss:$8 sps:$4 sm:$0xff]  }
  0x77   : > { %1311 = vmatmul.mubr.msk.bf16.vlgmr.msra.gmra.mxu1 %vm423_vm0, %v352_v8  ;;  %v1539_v24 = vld [vmem:[#allocation7 + $0x154] ss:$8 sps:$4 sm:$0xff]   ;;  %v1541_v26 = vld [vmem:[#allocation7 + $0x24] ss:$8 sps:$4 sm:$0xff]   ;;  %v1537_v27 = vld [vmem:[#allocation7 + $0x150] ss:$8 sps:$4 sm:$0xff]  }
  0x78   : > { %481 = vmatpush1.bf16.msra.mxu1 %v1511_v7  ;;  %500 = vmatprep.mubr.bf16.mxu1 %v1820_v0  ;;  %v1545_v28 = vld [vmem:[#allocation7 + $0x144] ss:$8 sps:$4 sm:$0xff]   ;;  %v1546_v29 = vld [vmem:[#allocation7 + $0x20] ss:$8 sps:$4 sm:$0xff]   ;;  %v1547_v30 = vld [vmem:[#allocation7 + $0x14] ss:$8 sps:$4 sm:$0xff]  }
  0x79   : > { %482 = vmatprep.subr.bf16.mxu1 %v1516_v12  ;;  %916 = vmatpush1.bf16.msra.mxu0 %v1522_v13  ;;  %v1543_v31 = vld [vmem:[#allocation7 + $0x140] ss:$8 sps:$4 sm:$0xff]   ;;  %v1551_v32 = vld [vmem:[#allocation7 + $0x134] ss:$8 sps:$4 sm:$0xff]   ;;  %v1552_v33 = vld [vmem:[#allocation7 + $0x10] ss:$8 sps:$4 sm:$0xff]   ;;  %v363_v12 = vlaneseq }
  0x7a   : > { %917 = vmatprep.subr.bf16.mxu0 %v1523_v14  ;;  %v1553_v34 = vld [vmem:[#allocation7 + $0x4] ss:$8 sps:$4 sm:$0xff]   ;;  %v1549_v35 = vld [vmem:[#allocation7 + $0x130] ss:$8 sps:$4 sm:$0xff]   ;;  %v1558_v37 = vld [vmem:[#allocation7] ss:$8 sps:$4 sm:$0xff]  }
  0x7b   : > { %v1557_v36 = vld [vmem:[#allocation7 + $0x124] ss:$8 sps:$4 sm:$0xff]   ;;  %v1559_v38 = vld [vmem:[#allocation7 + $0xf4] ss:$8 sps:$4 sm:$0xff]   ;;  %v1555_v39 = vld [vmem:[#allocation7 + $0x120] ss:$8 sps:$4 sm:$0xff]  }
  0x7c   : > { %483 = vmatpush1.bf16.msra.mxu1 %v1514_v15  ;;  %v1563_v40 = vld [vmem:[#allocation7 + $0x114] ss:$8 sps:$4 sm:$0xff]   ;;  %v1564_v41 = vld [vmem:[#allocation7 + $0xf0] ss:$8 sps:$4 sm:$0xff]   ;;  %v1565_v42 = vld [vmem:[#allocation7 + $0xe4] ss:$8 sps:$4 sm:$0xff]  }
  0x7d   : > { %954 = vmatprep.subr.bf16.mxu1 %v1527_v16  ;;  %918 = vmatpush1.bf16.msra.mxu0 %v1528_v17  ;;  %v1561_v43 = vld [vmem:[#allocation7 + $0x110] ss:$8 sps:$4 sm:$0xff]   ;;  %v1569_v44 = vld [vmem:[#allocation7 + $0x104] ss:$8 sps:$4 sm:$0xff]   ;;  %v1570_v45 = vld [vmem:[#allocation7 + $0xe0] ss:$8 sps:$4 sm:$0xff]  }
  0x7e   : > { %919 = vmatprep.subr.bf16.mxu0 %v1529_v18  ;;  %v1571_v46 = vld [vmem:[#allocation7 + $0xd4] ss:$8 sps:$4 sm:$0xff]   ;;  %v1567_v47 = vld [vmem:[#allocation7 + $0x100] ss:$8 sps:$4 sm:$0xff]   ;;  %v1576_v49 = vld [vmem:[#allocation7 + $0xd0] ss:$8 sps:$4 sm:$0xff]  }
  0x7f   : > { %1312 = vmatmul.mubr.msk.bf16.vlgmr.msra.gmra.mxu1 %vm423_vm0, %v352_v8  ;;  %v1575_v48 = vld [vmem:[#allocation7 + $0x1f4] ss:$8 sps:$4 sm:$0xff]   ;;  %v1577_v50 = vld [vmem:[#allocation7 + $0xc4] ss:$8 sps:$4 sm:$0xff]   ;;  %v1573_v51 = vld [vmem:[#allocation7 + $0x1f0] ss:$8 sps:$4 sm:$0xff]  }
  0x80   : > { %955 = vmatpush1.bf16.msra.mxu1 %v1525_v19  ;;  %v1581_v52 = vld [vmem:[#allocation7 + $0x1e4] ss:$8 sps:$4 sm:$0xff]   ;;  %v1582_v53 = vld [vmem:[#allocation7 + $0xc0] ss:$8 sps:$4 sm:$0xff]   ;;  %v1583_v54 = vld [vmem:[#allocation7 + $0xb4] ss:$8 sps:$4 sm:$0xff]  }
  0x81   : > { %956 = vmatprep.subr.bf16.mxu1 %v1533_v20  ;;  %920 = vmatpush1.bf16.msra.mxu0 %v1534_v21  ;;  %v1579_v55 = vld [vmem:[#allocation7 + $0x1e0] ss:$8 sps:$4 sm:$0xff]   ;;  %v1587_v56 = vld [vmem:[#allocation7 + $0x1d4] ss:$8 sps:$4 sm:$0xff]   ;;  %v1588_v57 = vld [vmem:[#allocation7 + $0xb0] ss:$8 sps:$4 sm:$0xff]  }
  0x82   : > { %921 = vmatprep.subr.bf16.mxu0 %v1535_v22  ;;  %v1589_v58 = vld [vmem:[#allocation7 + $0xa4] ss:$8 sps:$4 sm:$0xff]   ;;  %v1585_v59 = vld [vmem:[#allocation7 + $0x1d0] ss:$8 sps:$4 sm:$0xff]   ;;  %v1594_v61 = vld [vmem:[#allocation7 + $0xa0] ss:$8 sps:$4 sm:$0xff]  }
  0x83   : > { %v1593_v60 = vld [vmem:[#allocation7 + $0x1c4] ss:$8 sps:$4 sm:$0xff]   ;;  %v1591_v62 = vld [vmem:[#allocation7 + $0x1c0] ss:$8 sps:$4 sm:$0xff]   ;;  %v1595_v63 = vld [vmem:[#allocation7 + $0x94] ss:$8 sps:$4 sm:$0xff]  }
  0x84   : > { %957 = vmatpush1.bf16.msra.mxu1 %v1531_v23  ;;  %v1599_v0 = vld [vmem:[#allocation7 + $0x1b4] ss:$8 sps:$4 sm:$0xff]   ;;  %v1597_v1 = vld [vmem:[#allocation7 + $0x1b0] ss:$8 sps:$4 sm:$0xff]   ;;  %v1601_v3 = vld [vmem:[#allocation7 + $0x84] ss:$8 sps:$4 sm:$0xff]  }
  0x85   : > { %958 = vmatprep.subr.bf16.mxu1 %v1539_v24  ;;  %922 = vmatpush1.bf16.msra.mxu0 %v1540_v25  ;;  %v1600_v2 = vld [vmem:[#allocation7 + $0x90] ss:$8 sps:$4 sm:$0xff]   ;;  %v1605_v4 = vld [vmem:[#allocation7 + $0x1a4] ss:$8 sps:$4 sm:$0xff]   ;;  %v1603_v5 = vld [vmem:[#allocation7 + $0x1a0] ss:$8 sps:$4 sm:$0xff]  }
  0x86   : > { %923 = vmatprep.subr.bf16.mxu0 %v1541_v26  ;;  %v1606_v6 = vld [vmem:[#allocation7 + $0x80] ss:$8 sps:$4 sm:$0xff]   ;;  %v1609_v7 = vld [vmem:[#allocation7 + $0x194] ss:$8 sps:$4 sm:$0xff]   ;;  %v1607_v8 = vld [vmem:[#allocation7 + $0x190] ss:$8 sps:$4 sm:$0xff]  }
  0x87   : > { %v1612_v9 = vld [vmem:[#allocation7 + $0x184] ss:$8 sps:$4 sm:$0xff]   ;;  %v1610_v10 = vld [vmem:[#allocation7 + $0x180] ss:$8 sps:$4 sm:$0xff]   ;;  %v1613_v11 = vld [vmem:[#allocation9 + $0x78] sm:$0xff]   ;;  %v2006_v13 = vshrl.u32 %v363_v12, 7 }
  0x88   : > { %959 = vmatpush1.bf16.msra.mxu1 %v1537_v27  ;;  %v361_v15 = vld [vmem:[#allocation6] sm:$0xf]  ;;  %s2070_s30 = smov (!%p346_p6, %s1882_s30), 1 }
  0x89   : > { %960 = vmatprep.subr.bf16.mxu1 %v1545_v28  ;;  %924 = vmatpush1.bf16.msra.mxu0 %v1546_v29  ;;  %v365_v14 = vsub.s32 0, %v2006_v13  ;;  %v369_v16 = vsub.s32 1, %v2006_v13  ;;  %v373_v21 = vsub.s32 2, %v2006_v13  ;;  %v377_v24 = vsub.s32 3, %v2006_v13  ;;  %v1377_v13 = vld [vmem:[%s2050_s6] ss:$0 sm:$0xff] }
  0x8a   : > { %925 = vmatprep.subr.bf16.mxu0 %v1547_v30  ;;  %s1302_s14 = sshll.u32 %s2070_s30, 3 }
  0x8b   : > { %v366_v17 = vrot.slane %v361_v15, %v365_v14  ;;  %v370_v18 = vrot.slane %v361_v15, %v369_v16  ;;  %v374_v27 = vrot.slane %v361_v15, %v373_v21  ;;  %s349_s17 = scalar_lea.vmem %s2051_s7, %s1302_s14 }
  0x8c   : > { %961 = vmatpush1.bf16.msra.mxu1 %v1543_v31  ;;  %v378_v31 = vrot.slane %v361_v15, %v377_v24 }
  0x8d   : > { %962 = vmatprep.subr.bf16.mxu1 %v1551_v32  ;;  %926 = vmatpush1.bf16.msra.mxu0 %v1552_v33  ;;  %v1614_v32 = vld [vmem:[#allocation9 + $0x38] sm:$0xff]  }
  0x8e   : > { %927 = vmatprep.subr.bf16.mxu0 %v1553_v34 }
  0x90   : > { %963 = vmatpush1.bf16.msra.mxu1 %v1549_v35  ;;  %v1615_v35 = vld [vmem:[#allocation9 + $0x70] sm:$0xff]  }
  0x91   : > { %964 = vmatprep.subr.bf16.mxu1 %v1557_v36  ;;  %928 = vmatpush1.bf16.msra.mxu0 %v1558_v37 }
  0x92   : > { %929 = vmatprep.subr.bf16.mxu0 %v1559_v38 }
  0x94   : > { %965 = vmatpush1.bf16.msra.mxu1 %v1555_v39  ;;  %v1616_v39 = vld [vmem:[#allocation9 + $0x30] sm:$0xff]  }
  0x95   : > { %966 = vmatprep.subr.bf16.mxu1 %v1563_v40  ;;  %930 = vmatpush2.bf16.msra.mxu0 %v1564_v41 }
  0x96   : > { %931 = vmatprep.subr.bf16.mxu0 %v1565_v42  ;;  %v1617_v42 = vld [vmem:[#allocation9 + $0x68] sm:$0xff]  }
  0x98   : > { %967 = vmatpush1.bf16.msra.mxu1 %v1561_v43 }
  0x99   : > { %968 = vmatprep.subr.bf16.mxu1 %v1569_v44  ;;  %932 = vmatpush2.bf16.msra.mxu0 %v1570_v45 }
  0x9a   : > { %933 = vmatprep.subr.bf16.mxu0 %v1571_v46  ;;  %v1618_v46 = vld [vmem:[#allocation9 + $0x28] sm:$0xff]  }
  0x9c   : > { %969 = vmatpush1.bf16.msra.mxu1 %v1567_v47 }
  0x9d   : > { %970 = vmatprep.subr.bf16.mxu1 %v1575_v48  ;;  %934 = vmatpush2.bf16.msra.mxu0 %v1576_v49  ;;  %v1619_v48 = vld [vmem:[#allocation9 + $0x60] sm:$0xff]  }
  0x9e   : > { %935 = vmatprep.subr.bf16.mxu0 %v1577_v50  ;;  %v1620_v49 = vld [vmem:[#allocation9 + $0x20] sm:$0xff]   ;;  %v1621_v50 = vld [vmem:[#allocation9 + $0x58] sm:$0xff]  }
  0xa0   : > { %971 = vmatpush2.bf16.msra.mxu1 %v1573_v51  ;;  %v1622_v51 = vld [vmem:[#allocation9 + $0x18] sm:$0xff]  }
  0xa1   : > { %972 = vmatprep.subr.bf16.mxu1 %v1581_v52  ;;  %936 = vmatpush2.bf16.msra.mxu0 %v1582_v53  ;;  %v1623_v52 = vld [vmem:[#allocation9 + $0x50] sm:$0xff]  }
  0xa2   : > { %937 = vmatprep.subr.bf16.mxu0 %v1583_v54  ;;  %v1624_v53 = vld [vmem:[#allocation9 + $0x10] sm:$0xff]   ;;  %v1625_v54 = vld [vmem:[#allocation9 + $0x48] sm:$0xff]  }
  0xa4   : > { %973 = vmatpush2.bf16.msra.mxu1 %v1579_v55  ;;  %v1626_v55 = vld [vmem:[#allocation9 + $0x8] sm:$0xff]  }
  0xa5   : > { %974 = vmatprep.subr.bf16.mxu1 %v1587_v56  ;;  %938 = vmatpush2.bf16.msra.mxu0 %v1588_v57  ;;  %v1627_v56 = vld [vmem:[#allocation9 + $0x40] sm:$0xff]  }
  0xa6   : > { %939 = vmatprep.subr.bf16.mxu0 %v1589_v58  ;;  %v1628_v57 = vld [vmem:[#allocation9] sm:$0xff]   ;;  %v581_v58 = vld [vmem:[%s2048_s4] sm:$0x3] }
  0xa8   : > { %975 = vmatpush2.bf16.msra.mxu1 %v1585_v59 }
  0xa9   : > { %976 = vmatprep.subr.bf16.mxu1 %v1593_v60  ;;  %940 = vmatpush2.bf16.msra.mxu0 %v1594_v61  ;;  %v586_v61 = vrot.slane %v581_v58, %v365_v14 }
  0xaa   : > { %941 = vmatprep.subr.bf16.mxu0 %v1595_v63  ;;  %v590_v63 = vrot.slane %v581_v58, %v369_v16 }
  0xac   : > { %977 = vmatpush2.bf16.msra.mxu1 %v1591_v62 }
  0xad   : > { %978 = vmatprep.subr.bf16.mxu1 %v1599_v0  ;;  %942 = vmatpush2.bf16.msra.mxu0 %v1600_v2 }
  0xae   : > { %943 = vmatprep.subr.bf16.mxu0 %v1601_v3 }
  0xb0   : > { %979 = vmatpush2.bf16.msra.mxu1 %v1597_v1 }
  0xb1   : > { %980 = vmatprep.subr.bf16.mxu1 %v1605_v4  ;;  %944 = vmatpush2.bf16.msra.mxu0 %v1606_v6 }
  0xb2   : > { %1396 = vmatprep.subr.bf16.mxu0 %v1613_v11 }
  0xb4   : > { %981 = vmatpush2.bf16.msra.mxu1 %v1603_v5 }
  0xb5   : > { %982 = vmatprep.subr.bf16.mxu1 %v1609_v7 }
  0xb8   : > { %983 = vmatpush2.bf16.msra.mxu1 %v1607_v8 }
  0xb9   : > { %984 = vmatprep.subr.bf16.mxu1 %v1612_v9 }
  0xbc   : > { %985 = vmatpush2.bf16.msra.mxu1 %v1610_v10 }
 0x137   : > { %v461_v19 = vpop.f32.mrf.mxu1 }
 0x138   : > { %v462_v20 = vadd.f32 %v461_v19, %v366_v17 }
 0x139   : > { %v463_v22 = vpop.f32.mrf.mxu1 }
 0x13a   : > { %v464_v23 = vadd.f32 %v463_v22, %v370_v18  ;;  %v509_v25 = vmax.f32 %v462_v20, 0.0 }
 0x13b   : > { %v465_v26 = vpop.f32.mrf.mxu1 }
 0x13c   : > { %v510_v28 = vmax.f32 %v464_v23, 0.0  ;;  %v513_v33 = vpack.c.bf16 %v509_v25, %v509_v25 }
 0x13d   : > { %v466_v29 = vpop.f32.mrf.mxu1 }
 0x13e   : > { %v514_v30 = vpack.c.bf16 %v510_v28, %v510_v28 }
 0x13f   : > { %v502_v34 = vpop.f32.mrf.mxu1 }
 0x140   : > { %v503_v36 = vadd.f32 %v502_v34, %v374_v27  ;;  %945 = vmatprep.mubr.bf16.mxu0 %v514_v30 }
 0x141   : > { %v504_v37 = vpop.f32.mrf.mxu1  ;;  %946 = vmatmul.mubr.bf16.vlgmr.msra.gmra.mxu0 %v513_v33 }
 0x142   : > { %v505_v38 = vadd.f32 %v504_v37, %v378_v31  ;;  %1397 = vmatpush3.bf16.msra.mxu0 %v1614_v32  ;;  %v511_v40 = vmax.f32 %v503_v36, 0.0 }
 0x143   : > { %v506_v41 = vpop.f32.mrf.mxu1  ;;  %1398 = vmatprep.subr.bf16.mxu0 %v1615_v35 }
 0x144   : > { %v512_v43 = vmax.f32 %v505_v38, 0.0  ;;  %v515_v47 = vpack.c.bf16 %v511_v40, %v511_v40 }
 0x145   : > { %v507_v44 = vpop.f32.mrf.mxu1 }
 0x146   : > { %v516_v45 = vpack.c.bf16 %v512_v43, %v512_v43  ;;  %1399 = vmatpush3.bf16.msra.mxu0 %v1616_v39 }
 0x147   : > { %1400 = vmatprep.subr.bf16.mxu0 %v1617_v42 }
 0x148   : > { %986 = vmatprep.mubr.bf16.mxu1 %v516_v45 }
 0x149   : > { %987 = vmatmul.mubr.bf16.vlgmr.msra.gmra.mxu1 %v515_v47 }
 0x14a   : > { %1401 = vmatpush3.bf16.msra.mxu0 %v1618_v46 }
 0x14b   : > { %1402 = vmatprep.subr.bf16.mxu0 %v1619_v48 }
 0x14e   : > { %1403 = vmatpush3.bf16.msra.mxu0 %v1620_v49 }
 0x14f   : > { %1404 = vmatprep.subr.bf16.mxu0 %v1621_v50 }
 0x152   : > { %1405 = vmatpush3.bf16.msra.mxu0 %v1622_v51 }
 0x153   : > { %1406 = vmatprep.subr.bf16.mxu0 %v1623_v52 }
 0x156   : > { %1407 = vmatpush3.bf16.msra.mxu0 %v1624_v53 }
 0x157   : > { %1408 = vmatprep.subr.bf16.mxu0 %v1625_v54 }
 0x15a   : > { %1409 = vmatpush3.bf16.msra.mxu0 %v1626_v55 }
 0x15b   : > { %1410 = vmatprep.subr.bf16.mxu0 %v1627_v56 }
 0x15e   : > { %1411 = vmatpush3.bf16.msra.mxu0 %v1628_v57 }
 0x201   : > { %v947_v59 = vpop.f32.mrf.mxu0 }
 0x202   : > { %v948_v1 = vadd.f32 %v947_v59, %v586_v61 }
 0x203   : > { %v949_v60 = vpop.f32.mrf.mxu0 }
 0x204   : > { %v950_v3 = vadd.f32 %v949_v60, %v590_v63 }
 0x205   : > { %v951_v62 = vpop.f32.mrf.mxu0 }
 0x207   : > { %v952_v0 = vpop.f32.mrf.mxu0 }
 0x209   : > { %v988_v2 = vpop.f32.mrf.mxu1 }
 0x20a   : > { %v989_v4 = vadd.f32 %v988_v2, %v948_v1 }
 0x20b   : > { %v990_v5 = vpop.f32.mrf.mxu1 }
 0x20c   : > { %v991_v6 = vadd.f32 %v990_v5, %v950_v3  ;;  %v995_v7 = vmax.f32 %v989_v4, 0.0 }
 0x20d   : > { %v992_v8 = vpop.f32.mrf.mxu1 }
 0x20e   : > { %v996_v9 = vmax.f32 %v991_v6, 0.0  ;;  %v997_v12 = vpack.c.bf16 %v995_v7, %v995_v7 }
 0x20f   : > { %v993_v10 = vpop.f32.mrf.mxu1 }
 0x210   : > { %v998_v11 = vpack.c.bf16 %v996_v9, %v996_v9 }
 0x212   : > { %1166 = vmatprep.mubr.bf16.mxu0 %v998_v11 }
 0x213   : > { %1167 = vmatmul.mubr.bf16.vlgmr.msra.gmra.mxu0 %v997_v12 }
 0x2d3   : > { %v1412_v14 = vpop.f32.mrf.mxu0 }
 0x2d5   : > { %v1413_v15 = vpop.f32.mrf.mxu0 }
 0x2d6   : > { %v1414_v16 = vadd.f32 %v1413_v15, %v1412_v14 }
 0x2d7   : > { %v1415_v17 = vpop.f32.mrf.mxu0 }
 0x2d8   : > { %v1169_v18 = vadd.f32 %v1414_v16, %v1377_v13 }
 0x2d9   : > { %v1416_v19 = vpop.f32.mrf.mxu0 }
 0x2da   : > { %1174 = vmax.xlane.f32.xlu0 %v1169_v18 }
 0x363   : > { %v1175_v20 = vpop.xlane.xlu0 %1174 }
 0x364   : > { %v1176_v21 = vsub.f32 %v1169_v18, %v1175_v20 }
 0x366   : > { %v1177_v22 = vmul.f32 1.442695, %v1176_v21 }
 0x368   : > { %1629 = vpow2.f32 %v1177_v22 }
 0x375   : > { %v1630_v23 = vpop.eup %1629 }
 0x376   : > { %1179 = vadd.xlane.f32.xlu0 %v1630_v23 }
 0x3ff   : > { %v1180_v24 = vpop.xlane.xlu0 %1179 }
 0x400   : > { %1631 = vrcp.f32 %v1180_v24 }
 0x40d   : > { %v1632_v25 = vpop.eup %1631 }
 0x40e   : > { %v1182_v26 = vmul.f32 %v1632_v25, %v1630_v23 }
 0x410   : > { %1183 = vst [vmem:[%s349_s17] sm:$0xff] %v1182_v26 }
 0x411 PF: > { %p19_p2 = scmp.ge.s32.totalorder %s1944_s18, 4   ;;  %s2065_s24 = smov %s1799_s25 }
 0x412   : > { %s2066_s25 = smov %s1803_s26  ;;  %s2067_s26 = smov %s1956_s21 }
 0x413   : > { %s2068_s27 = smov %s1944_s18  ;;  %21 = sbr.rel (!%p19_p2) target bundleno = 5 (0x5), region = 104 }
 0x418   :  { %1203 = vsyncpa [#allocation3], 1 }
 0x419   :  { %1205 = vsyncpa [#allocation3 + $0x1], 1 }
 0x41a   :  { %1206 = vsyncpa [#allocation5], 1 }
 0x41b   :  { %1207 = vsyncpa [#allocation8], 1 }

</bundles_post_ra>
